<compile_context>
chip_gen: v6e
topology: v6e:2x2x1
jax: 0.10.0
libtpu: 0.0.40
codegen_flags: <defaults>
</compile_context>

<pallas_src>
import math

import jax
import jax.numpy as jnp
import numpy as np
from jax import lax
from jax.experimental import pallas as pl
from jax.experimental.pallas import tpu as pltpu


def _lstm_kernel(g_ref, h0_ref, wh_ref, out_ref, h_scr, c_scr):
    """Recurrent LSTM core for one (batch-block, time-chunk) grid step.

    g_ref  : (TC, NB, 4H)  pre-gates  x @ Wx + b  for TC timesteps
    h0_ref : (NB, H)       initial hidden state for this batch block
    wh_ref : (H, 4H)       hidden-to-hidden weights (VMEM-resident)
    out_ref: (TC, NB, H)   hidden-state outputs for the TC timesteps
    h_scr  : (NB, H) f32   carried hidden state (lives across the T grid axis)
    c_scr  : (NB, H) f32   carried cell state
    """
    t_blk = pl.program_id(1)

    @pl.when(t_blk == 0)
    def _():
        h_scr[...] = h0_ref[...].astype(jnp.float32)
        c_scr[...] = jnp.zeros_like(c_scr)          # c0 = 0 (as in the module)

    hdim = h_scr.shape[1]
    wh = wh_ref[...]                    # hoisted: read once per grid step

    def step(s, carry):
        prev_h = h_scr[...]
        prev_c = c_scr[...]
        # pre-gate (hoisted GEMM) + recurrent matmul, f32 accumulation on MXU
        a = g_ref[s].astype(jnp.float32) + jnp.dot(
            prev_h.astype(wh.dtype), wh, preferred_element_type=jnp.float32)
        # Gate order (i, f, o, g) matches torch.chunk in the reference module.
        # For production sizes keep H a multiple of 128 so these slices are
        # lane-tile aligned and the output stores are lane-dense.
        i = jax.nn.sigmoid(a[:, 0 * hdim:1 * hdim])
        f = jax.nn.sigmoid(a[:, 1 * hdim:2 * hdim])
        o = jax.nn.sigmoid(a[:, 2 * hdim:3 * hdim])
        g = jnp.tanh(a[:, 3 * hdim:4 * hdim])
        next_c = f * prev_c + i * g
        next_h = o * jnp.tanh(next_c)
        c_scr[...] = next_c
        h_scr[...] = next_h
        out_ref[s] = next_h.astype(out_ref.dtype)
        return carry

    # TC is small and static -> unroll so the LLO scheduler sees the whole chunk.
    lax.fori_loop(0, g_ref.shape[0], step, 0, unroll=True)


def _largest_divisor(n, cap, step=1):
    """Largest multiple of `step` that divides n and is <= min(cap, n)."""
    best = step
    d = step
    while d <= min(cap, n):
        if n % d == 0:
            best = d
        d += step
    return best


def _choose_tiles(T, n_pad, H, g_bytes, out_bytes, time_chunk, batch_block,
                  vmem_budget):
    """Pick (time_chunk, batch_block) so double-buffered blocks fit in VMEM."""

    def est(tc, nb):
        g_blk = 2 * tc * nb * 4 * H * g_bytes        # pre-gates, double-buffered
        o_blk = 2 * tc * nb * H * out_bytes          # outputs, double-buffered
        wh = 2 * H * 4 * H * g_bytes                 # resident weights
        h0 = 2 * nb * H * out_bytes                  # initial state
        scr = 2 * nb * H * 4                         # f32 h/c carries
        return g_blk + o_blk + wh + h0 + scr

    nb = _largest_divisor(n_pad, max(8, batch_block), step=8)
    tc = _largest_divisor(T, max(1, time_chunk))
    # Shrink the time chunk first (cheapest to shrink), then the batch block.
    while est(tc, nb) > vmem_budget and tc > 1:
        tc = _largest_divisor(T, tc - 1)
    while est(tc, nb) > vmem_budget and nb > 8:
        nb = _largest_divisor(n_pad, nb - 8, step=8)
    return tc, nb


def lstm_forward(x, h0, Wx, Wh, b, *, time_chunk=16, batch_block=128):
    """LSTM forward over a full sequence.

    Args:
        x : (N, T, D)
        h0: (N, H)
        Wx: (D, 4H)
        Wh: (H, 4H)
        b : (4H,)
    Returns:
        hn: (N, T, H) hidden states for all timesteps.
    """
    N, T, D = x.shape
    H = h0.shape[1]
    assert Wx.shape == (D, 4 * H)
    assert Wh.shape == (H, 4 * H)
    assert b.shape == (4 * H,)

    # --- pad batch to a sublane multiple (8) so VPU/MXU rows aren't wasted ---
    n_pad = max(8, ((N + 7) // 8) * 8)
    if n_pad != N:
        x = jnp.pad(x, ((0, n_pad - N), (0, 0), (0, 0)))
        h0 = jnp.pad(h0, ((0, n_pad - N), (0, 0)))

    # --- hoisted input projection: ONE big MXU-shaped GEMM over all T*N rows -
    # time-major so each grid step streams a contiguous (TC, NB, 4H) slab.
    x_tm = jnp.transpose(x, (1, 0, 2))                          # (T, Np, D)
    g = (x_tm.reshape(T * n_pad, D) @ Wx + b).reshape(T, n_pad, 4 * H)

    # --- tiling (VMEM-budget aware so it works on v5e / v6e / v7x) -----------
    g_bytes = g.dtype.itemsize
    out_bytes = h0.dtype.itemsize
    tc, nb = _choose_tiles(T, n_pad, H, g_bytes, out_bytes,
                           time_chunk, batch_block,
                           vmem_budget=32 * 1024 * 1024)
    grid = (n_pad // nb, T // tc)

    out_tm = pl.pallas_call(
        _lstm_kernel,
        out_shape=jax.ShapeDtypeStruct((T, n_pad, H), h0.dtype),
        grid_spec=pltpu.PrefetchScalarGridSpec(
            num_scalar_prefetch=0,
            grid=grid,
            in_specs=[
                # pre-gates for this (batch block, time chunk)
                pl.BlockSpec((tc, nb, 4 * H), lambda bi, ti: (ti, bi, 0)),
                # initial hidden state for this batch block
                pl.BlockSpec((nb, H), lambda bi, ti: (bi, 0)),
                # recurrent weights: constant index_map -> fetched into VMEM
                # once and kept resident for the whole grid.
                pl.BlockSpec((H, 4 * H), lambda bi, ti: (0, 0)),
            ],
            out_specs=pl.BlockSpec((tc, nb, H), lambda bi, ti: (ti, bi, 0)),
            scratch_shapes=[
                pltpu.VMEM((nb, H), jnp.float32),   # h carry
                pltpu.VMEM((nb, H), jnp.float32),   # c carry
            ],
        ),
        compiler_params=pltpu.CompilerParams(
            # batch blocks are independent (shardable across TensorCores);
            # the time axis carries the recurrence and must stay sequential.
            dimension_semantics=("parallel", "arbitrary"),
            vmem_limit_bytes=48 * 1024 * 1024,
        ),
    )(g, h0, Wh)

    hn = jnp.transpose(out_tm, (1, 0, 2))                       # (Np, T, H)
    return hn[:N]


def lstm_reference(x, h0, Wx, Wh, b):
    """Pure-JAX reference identical to the PyTorch module's forward."""
    c0 = jnp.zeros_like(h0)

    def step(carry, x_t):
        prev_h, prev_c = carry
        a = x_t @ Wx + prev_h @ Wh + b
        H = prev_h.shape[1]
        ai, af, ao, ag = a[:, :H], a[:, H:2 * H], a[:, 2 * H:3 * H], a[:, 3 * H:]
        i, f, o, g = (jax.nn.sigmoid(ai), jax.nn.sigmoid(af),
                      jax.nn.sigmoid(ao), jnp.tanh(ag))
        next_c = f * prev_c + i * g
        next_h = o * jnp.tanh(next_c)
        return (next_h, next_c), next_h

    (_, _), hs = lax.scan(step, (h0, c0), jnp.transpose(x, (1, 0, 2)))
    return jnp.transpose(hs, (1, 0, 2))


if __name__ == "__main__":
    # Small shapes consistent with the module: N batch, T timesteps, D input, H hidden.
    N, T, D, H = 2, 8, 32, 32

    key = jax.random.PRNGKey(0)
    k_x, k_h0, k_wx, k_wh = jax.random.split(key, 4)

    x = jax.random.normal(k_x, (N, T, D), dtype=jnp.float32)
    h0 = jax.random.normal(k_h0, (N, H), dtype=jnp.float32)

    # Deterministic parameter init mirroring the PyTorch __init__:
    #   Wx ~ randn(D, 4H) / sqrt(D), Wh ~ randn(H, 4H) / sqrt(H), b = 0
    Wx = jax.random.normal(k_wx, (D, 4 * H), dtype=jnp.float32) / math.sqrt(D)
    Wh = jax.random.normal(k_wh, (H, 4 * H), dtype=jnp.float32) / math.sqrt(H)
    b = jnp.zeros((4 * H,), dtype=jnp.float32)

    hn = jax.block_until_ready(lstm_forward(x, h0, Wx, Wh, b))
    hn_ref = jax.block_until_ready(lstm_reference(x, h0, Wx, Wh, b))
    np.testing.assert_allclose(np.asarray(hn), np.asarray(hn_ref),
                               rtol=1e-5, atol=1e-5)

    print("KERNEL_OK")
</pallas_src>

<mosaic_0001>
module attributes {stable_mosaic.version = 11 : i64} {
  func.func @_lstm_kernel(%arg0: i32, %arg1: i32, %arg2: memref<8x8x128xf32, #tpu.memory_space<vmem>>, %arg3: memref<8x32xf32, #tpu.memory_space<vmem>>, %arg4: memref<32x128xf32, #tpu.memory_space<vmem>>, %arg5: memref<8x8x32xf32, #tpu.memory_space<vmem>>, %arg6: memref<8x32xf32, #tpu.memory_space<vmem>>, %arg7: memref<8x32xf32, #tpu.memory_space<vmem>>) attributes {dimension_semantics = [#tpu.dimension_semantics<parallel>, #tpu.dimension_semantics<arbitrary>], iteration_bounds = array<i64: 1, 1>, scalar_prefetch = 0 : i64, scratch_operands = 2 : i64, tpu.core_type = #tpu.core_type<tc>, window_params = [{transform_indices = @transform_0, window_bounds = array<i64: 8, 8, 128>}, {transform_indices = @transform_1, window_bounds = array<i64: 8, 32>}, {pipeline_mode = #tpu.pipeline_mode<synchronous>, transform_indices = @transform_2, window_bounds = array<i64: 32, 128>}, {transform_indices = @transform_3, window_bounds = array<i64: 8, 8, 32>}]} {
    %c0_i32 = arith.constant 0 : i32
    %0 = arith.cmpi eq, %arg1, %c0_i32 : i32
    %1 = arith.extui %0 : i1 to i32
    %c0_i32_0 = arith.constant 0 : i32
    %2 = arith.cmpi ne, %1, %c0_i32_0 : i32
    scf.if %2 {
      %c0_130 = arith.constant 0 : index
      %c0_131 = arith.constant 0 : index
      %308 = vector.load %arg3[%c0_130, %c0_131] : memref<8x32xf32, #tpu.memory_space<vmem>>, vector<8x32xf32>
      %c0_132 = arith.constant 0 : index
      %c0_133 = arith.constant 0 : index
      %309 = vector.load %arg6[%c0_132, %c0_133] : memref<8x32xf32, #tpu.memory_space<vmem>>, vector<8x32xf32>
      tpu.vector_store %arg6[%c0_132, %c0_133], %308 {strides = array<i32>} : memref<8x32xf32, #tpu.memory_space<vmem>>, vector<8x32xf32>,
      %cst_134 = arith.constant 0.000000e+00 : f32
      %310 = vector.broadcast %cst_134 : f32 to vector<8x32xf32>
      %c0_135 = arith.constant 0 : index
      %c0_136 = arith.constant 0 : index
      %311 = vector.load %arg7[%c0_135, %c0_136] : memref<8x32xf32, #tpu.memory_space<vmem>>, vector<8x32xf32>
      tpu.vector_store %arg7[%c0_135, %c0_136], %310 {strides = array<i32>} : memref<8x32xf32, #tpu.memory_space<vmem>>, vector<8x32xf32>,
    } else {
    }
    %c0 = arith.constant 0 : index
    %c0_1 = arith.constant 0 : index
    %3 = vector.load %arg4[%c0, %c0_1] : memref<32x128xf32, #tpu.memory_space<vmem>>, vector<32x128xf32>
    %c0_i32_2 = arith.constant 0 : i32
    %c0_3 = arith.constant 0 : index
    %c0_4 = arith.constant 0 : index
    %4 = vector.load %arg6[%c0_3, %c0_4] : memref<8x32xf32, #tpu.memory_space<vmem>>, vector<8x32xf32>
    %c0_5 = arith.constant 0 : index
    %c0_6 = arith.constant 0 : index
    %5 = vector.load %arg7[%c0_5, %c0_6] : memref<8x32xf32, #tpu.memory_space<vmem>>, vector<8x32xf32>
    %6 = arith.index_cast %c0_i32_2 : i32 to index
    %c0_7 = arith.constant 0 : index
    %c0_8 = arith.constant 0 : index
    %7 = vector.load %arg2[%6, %c0_7, %c0_8] : memref<8x8x128xf32, #tpu.memory_space<vmem>>, vector<1x8x128xf32>
    %8 = vector.shape_cast %7 : vector<1x8x128xf32> to vector<8x128xf32>
    %cst = arith.constant dense<0.000000e+00> : vector<8x128xf32>
    %9 = tpu.matmul %4, %3, %cst {dimension_numbers = #tpu.dot_dimension_numbers<[1], [0], [0], [1], [0, 0, 1, 1], [], []>} : vector<8x32xf32>, vector<32x128xf32>, vector<8x128xf32> -> vector<8x128xf32>
    %10 = arith.addf %8, %9 : vector<8x128xf32>
    %11 = vector.extract_strided_slice %10 {offsets = [0, 0], sizes = [8, 32], strides = [1, 1]} : vector<8x128xf32> to vector<8x32xf32>
    %12 = arith.negf %11 : vector<8x32xf32>
    %13 = math.exp %12 : vector<8x32xf32>
    %cst_9 = arith.constant 1.000000e+00 : f32
    %14 = vector.broadcast %cst_9 : f32 to vector<8x32xf32>
    %15 = arith.addf %14, %13 : vector<8x32xf32>
    %16 = arith.divf %14, %15 : vector<8x32xf32>
    %17 = vector.extract_strided_slice %10 {offsets = [0, 32], sizes = [8, 32], strides = [1, 1]} : vector<8x128xf32> to vector<8x32xf32>
    %18 = arith.negf %17 : vector<8x32xf32>
    %19 = math.exp %18 : vector<8x32xf32>
    %cst_10 = arith.constant 1.000000e+00 : f32
    %20 = vector.broadcast %cst_10 : f32 to vector<8x32xf32>
    %21 = arith.addf %20, %19 : vector<8x32xf32>
    %22 = arith.divf %20, %21 : vector<8x32xf32>
    %23 = vector.extract_strided_slice %10 {offsets = [0, 64], sizes = [8, 32], strides = [1, 1]} : vector<8x128xf32> to vector<8x32xf32>
    %24 = arith.negf %23 : vector<8x32xf32>
    %25 = math.exp %24 : vector<8x32xf32>
    %cst_11 = arith.constant 1.000000e+00 : f32
    %26 = vector.broadcast %cst_11 : f32 to vector<8x32xf32>
    %27 = arith.addf %26, %25 : vector<8x32xf32>
    %28 = arith.divf %26, %27 : vector<8x32xf32>
    %29 = vector.extract_strided_slice %10 {offsets = [0, 96], sizes = [8, 32], strides = [1, 1]} : vector<8x128xf32> to vector<8x32xf32>
    %30 = math.tanh %29 : vector<8x32xf32>
    %31 = arith.mulf %22, %5 : vector<8x32xf32>
    %32 = arith.mulf %16, %30 : vector<8x32xf32>
    %33 = arith.addf %31, %32 : vector<8x32xf32>
    %34 = math.tanh %33 : vector<8x32xf32>
    %35 = arith.mulf %28, %34 : vector<8x32xf32>
    %c0_12 = arith.constant 0 : index
    %c0_13 = arith.constant 0 : index
    %36 = vector.load %arg7[%c0_12, %c0_13] : memref<8x32xf32, #tpu.memory_space<vmem>>, vector<8x32xf32>
    tpu.vector_store %arg7[%c0_12, %c0_13], %33 {strides = array<i32>} : memref<8x32xf32, #tpu.memory_space<vmem>>, vector<8x32xf32>,
    %c0_14 = arith.constant 0 : index
    %c0_15 = arith.constant 0 : index
    %37 = vector.load %arg6[%c0_14, %c0_15] : memref<8x32xf32, #tpu.memory_space<vmem>>, vector<8x32xf32>
    tpu.vector_store %arg6[%c0_14, %c0_15], %35 {strides = array<i32>} : memref<8x32xf32, #tpu.memory_space<vmem>>, vector<8x32xf32>,
    %38 = arith.index_cast %c0_i32_2 : i32 to index
    %c0_16 = arith.constant 0 : index
    %c0_17 = arith.constant 0 : index
    %39 = vector.load %arg5[%38, %c0_16, %c0_17] : memref<8x8x32xf32, #tpu.memory_space<vmem>>, vector<1x8x32xf32>
    %40 = vector.shape_cast %39 : vector<1x8x32xf32> to vector<8x32xf32>
    %41 = vector.shape_cast %35 : vector<8x32xf32> to vector<1x8x32xf32>
    tpu.vector_store %arg5[%38, %c0_16, %c0_17], %41 {strides = array<i32>} : memref<8x8x32xf32, #tpu.memory_space<vmem>>, vector<1x8x32xf32>,
    %c1_i32 = arith.constant 1 : i32
    %c0_18 = arith.constant 0 : index
    %c0_19 = arith.constant 0 : index
    %42 = vector.load %arg6[%c0_18, %c0_19] : memref<8x32xf32, #tpu.memory_space<vmem>>, vector<8x32xf32>
    %c0_20 = arith.constant 0 : index
    %c0_21 = arith.constant 0 : index
    %43 = vector.load %arg7[%c0_20, %c0_21] : memref<8x32xf32, #tpu.memory_space<vmem>>, vector<8x32xf32>
    %44 = arith.index_cast %c1_i32 : i32 to index
    %c0_22 = arith.constant 0 : index
    %c0_23 = arith.constant 0 : index
    %45 = vector.load %arg2[%44, %c0_22, %c0_23] : memref<8x8x128xf32, #tpu.memory_space<vmem>>, vector<1x8x128xf32>
    %46 = vector.shape_cast %45 : vector<1x8x128xf32> to vector<8x128xf32>
    %cst_24 = arith.constant dense<0.000000e+00> : vector<8x128xf32>
    %47 = tpu.matmul %42, %3, %cst_24 {dimension_numbers = #tpu.dot_dimension_numbers<[1], [0], [0], [1], [0, 0, 1, 1], [], []>} : vector<8x32xf32>, vector<32x128xf32>, vector<8x128xf32> -> vector<8x128xf32>
    %48 = arith.addf %46, %47 : vector<8x128xf32>
    %49 = vector.extract_strided_slice %48 {offsets = [0, 0], sizes = [8, 32], strides = [1, 1]} : vector<8x128xf32> to vector<8x32xf32>
    %50 = arith.negf %49 : vector<8x32xf32>
    %51 = math.exp %50 : vector<8x32xf32>
    %cst_25 = arith.constant 1.000000e+00 : f32
    %52 = vector.broadcast %cst_25 : f32 to vector<8x32xf32>
    %53 = arith.addf %52, %51 : vector<8x32xf32>
    %54 = arith.divf %52, %53 : vector<8x32xf32>
    %55 = vector.extract_strided_slice %48 {offsets = [0, 32], sizes = [8, 32], strides = [1, 1]} : vector<8x128xf32> to vector<8x32xf32>
    %56 = arith.negf %55 : vector<8x32xf32>
    %57 = math.exp %56 : vector<8x32xf32>
    %cst_26 = arith.constant 1.000000e+00 : f32
    %58 = vector.broadcast %cst_26 : f32 to vector<8x32xf32>
    %59 = arith.addf %58, %57 : vector<8x32xf32>
    %60 = arith.divf %58, %59 : vector<8x32xf32>
    %61 = vector.extract_strided_slice %48 {offsets = [0, 64], sizes = [8, 32], strides = [1, 1]} : vector<8x128xf32> to vector<8x32xf32>
    %62 = arith.negf %61 : vector<8x32xf32>
    %63 = math.exp %62 : vector<8x32xf32>
    %cst_27 = arith.constant 1.000000e+00 : f32
    %64 = vector.broadcast %cst_27 : f32 to vector<8x32xf32>
    %65 = arith.addf %64, %63 : vector<8x32xf32>
    %66 = arith.divf %64, %65 : vector<8x32xf32>
    %67 = vector.extract_strided_slice %48 {offsets = [0, 96], sizes = [8, 32], strides = [1, 1]} : vector<8x128xf32> to vector<8x32xf32>
    %68 = math.tanh %67 : vector<8x32xf32>
    %69 = arith.mulf %60, %43 : vector<8x32xf32>
    %70 = arith.mulf %54, %68 : vector<8x32xf32>
    %71 = arith.addf %69, %70 : vector<8x32xf32>
    %72 = math.tanh %71 : vector<8x32xf32>
    %73 = arith.mulf %66, %72 : vector<8x32xf32>
    %c0_28 = arith.constant 0 : index
    %c0_29 = arith.constant 0 : index
    %74 = vector.load %arg7[%c0_28, %c0_29] : memref<8x32xf32, #tpu.memory_space<vmem>>, vector<8x32xf32>
    tpu.vector_store %arg7[%c0_28, %c0_29], %71 {strides = array<i32>} : memref<8x32xf32, #tpu.memory_space<vmem>>, vector<8x32xf32>,
    %c0_30 = arith.constant 0 : index
    %c0_31 = arith.constant 0 : index
    %75 = vector.load %arg6[%c0_30, %c0_31] : memref<8x32xf32, #tpu.memory_space<vmem>>, vector<8x32xf32>
    tpu.vector_store %arg6[%c0_30, %c0_31], %73 {strides = array<i32>} : memref<8x32xf32, #tpu.memory_space<vmem>>, vector<8x32xf32>,
    %76 = arith.index_cast %c1_i32 : i32 to index
    %c0_32 = arith.constant 0 : index
    %c0_33 = arith.constant 0 : index
    %77 = vector.load %arg5[%76, %c0_32, %c0_33] : memref<8x8x32xf32, #tpu.memory_space<vmem>>, vector<1x8x32xf32>
    %78 = vector.shape_cast %77 : vector<1x8x32xf32> to vector<8x32xf32>
    %79 = vector.shape_cast %73 : vector<8x32xf32> to vector<1x8x32xf32>
    tpu.vector_store %arg5[%76, %c0_32, %c0_33], %79 {strides = array<i32>} : memref<8x8x32xf32, #tpu.memory_space<vmem>>, vector<1x8x32xf32>,
    %c2_i32 = arith.constant 2 : i32
    %c0_34 = arith.constant 0 : index
    %c0_35 = arith.constant 0 : index
    %80 = vector.load %arg6[%c0_34, %c0_35] : memref<8x32xf32, #tpu.memory_space<vmem>>, vector<8x32xf32>
    %c0_36 = arith.constant 0 : index
    %c0_37 = arith.constant 0 : index
    %81 = vector.load %arg7[%c0_36, %c0_37] : memref<8x32xf32, #tpu.memory_space<vmem>>, vector<8x32xf32>
    %82 = arith.index_cast %c2_i32 : i32 to index
    %c0_38 = arith.constant 0 : index
    %c0_39 = arith.constant 0 : index
    %83 = vector.load %arg2[%82, %c0_38, %c0_39] : memref<8x8x128xf32, #tpu.memory_space<vmem>>, vector<1x8x128xf32>
    %84 = vector.shape_cast %83 : vector<1x8x128xf32> to vector<8x128xf32>
    %cst_40 = arith.constant dense<0.000000e+00> : vector<8x128xf32>
    %85 = tpu.matmul %80, %3, %cst_40 {dimension_numbers = #tpu.dot_dimension_numbers<[1], [0], [0], [1], [0, 0, 1, 1], [], []>} : vector<8x32xf32>, vector<32x128xf32>, vector<8x128xf32> -> vector<8x128xf32>
    %86 = arith.addf %84, %85 : vector<8x128xf32>
    %87 = vector.extract_strided_slice %86 {offsets = [0, 0], sizes = [8, 32], strides = [1, 1]} : vector<8x128xf32> to vector<8x32xf32>
    %88 = arith.negf %87 : vector<8x32xf32>
    %89 = math.exp %88 : vector<8x32xf32>
    %cst_41 = arith.constant 1.000000e+00 : f32
    %90 = vector.broadcast %cst_41 : f32 to vector<8x32xf32>
    %91 = arith.addf %90, %89 : vector<8x32xf32>
    %92 = arith.divf %90, %91 : vector<8x32xf32>
    %93 = vector.extract_strided_slice %86 {offsets = [0, 32], sizes = [8, 32], strides = [1, 1]} : vector<8x128xf32> to vector<8x32xf32>
    %94 = arith.negf %93 : vector<8x32xf32>
    %95 = math.exp %94 : vector<8x32xf32>
    %cst_42 = arith.constant 1.000000e+00 : f32
    %96 = vector.broadcast %cst_42 : f32 to vector<8x32xf32>
    %97 = arith.addf %96, %95 : vector<8x32xf32>
    %98 = arith.divf %96, %97 : vector<8x32xf32>
    %99 = vector.extract_strided_slice %86 {offsets = [0, 64], sizes = [8, 32], strides = [1, 1]} : vector<8x128xf32> to vector<8x32xf32>
    %100 = arith.negf %99 : vector<8x32xf32>
    %101 = math.exp %100 : vector<8x32xf32>
    %cst_43 = arith.constant 1.000000e+00 : f32
    %102 = vector.broadcast %cst_43 : f32 to vector<8x32xf32>
    %103 = arith.addf %102, %101 : vector<8x32xf32>
    %104 = arith.divf %102, %103 : vector<8x32xf32>
    %105 = vector.extract_strided_slice %86 {offsets = [0, 96], sizes = [8, 32], strides = [1, 1]} : vector<8x128xf32> to vector<8x32xf32>
    %106 = math.tanh %105 : vector<8x32xf32>
    %107 = arith.mulf %98, %81 : vector<8x32xf32>
    %108 = arith.mulf %92, %106 : vector<8x32xf32>
    %109 = arith.addf %107, %108 : vector<8x32xf32>
    %110 = math.tanh %109 : vector<8x32xf32>
    %111 = arith.mulf %104, %110 : vector<8x32xf32>
    %c0_44 = arith.constant 0 : index
    %c0_45 = arith.constant 0 : index
    %112 = vector.load %arg7[%c0_44, %c0_45] : memref<8x32xf32, #tpu.memory_space<vmem>>, vector<8x32xf32>
    tpu.vector_store %arg7[%c0_44, %c0_45], %109 {strides = array<i32>} : memref<8x32xf32, #tpu.memory_space<vmem>>, vector<8x32xf32>,
    %c0_46 = arith.constant 0 : index
    %c0_47 = arith.constant 0 : index
    %113 = vector.load %arg6[%c0_46, %c0_47] : memref<8x32xf32, #tpu.memory_space<vmem>>, vector<8x32xf32>
    tpu.vector_store %arg6[%c0_46, %c0_47], %111 {strides = array<i32>} : memref<8x32xf32, #tpu.memory_space<vmem>>, vector<8x32xf32>,
    %114 = arith.index_cast %c2_i32 : i32 to index
    %c0_48 = arith.constant 0 : index
    %c0_49 = arith.constant 0 : index
    %115 = vector.load %arg5[%114, %c0_48, %c0_49] : memref<8x8x32xf32, #tpu.memory_space<vmem>>, vector<1x8x32xf32>
    %116 = vector.shape_cast %115 : vector<1x8x32xf32> to vector<8x32xf32>
    %117 = vector.shape_cast %111 : vector<8x32xf32> to vector<1x8x32xf32>
    tpu.vector_store %arg5[%114, %c0_48, %c0_49], %117 {strides = array<i32>} : memref<8x8x32xf32, #tpu.memory_space<vmem>>, vector<1x8x32xf32>,
    %c3_i32 = arith.constant 3 : i32
    %c0_50 = arith.constant 0 : index
    %c0_51 = arith.constant 0 : index
    %118 = vector.load %arg6[%c0_50, %c0_51] : memref<8x32xf32, #tpu.memory_space<vmem>>, vector<8x32xf32>
    %c0_52 = arith.constant 0 : index
    %c0_53 = arith.constant 0 : index
    %119 = vector.load %arg7[%c0_52, %c0_53] : memref<8x32xf32, #tpu.memory_space<vmem>>, vector<8x32xf32>
    %120 = arith.index_cast %c3_i32 : i32 to index
    %c0_54 = arith.constant 0 : index
    %c0_55 = arith.constant 0 : index
    %121 = vector.load %arg2[%120, %c0_54, %c0_55] : memref<8x8x128xf32, #tpu.memory_space<vmem>>, vector<1x8x128xf32>
    %122 = vector.shape_cast %121 : vector<1x8x128xf32> to vector<8x128xf32>
    %cst_56 = arith.constant dense<0.000000e+00> : vector<8x128xf32>
    %123 = tpu.matmul %118, %3, %cst_56 {dimension_numbers = #tpu.dot_dimension_numbers<[1], [0], [0], [1], [0, 0, 1, 1], [], []>} : vector<8x32xf32>, vector<32x128xf32>, vector<8x128xf32> -> vector<8x128xf32>
    %124 = arith.addf %122, %123 : vector<8x128xf32>
    %125 = vector.extract_strided_slice %124 {offsets = [0, 0], sizes = [8, 32], strides = [1, 1]} : vector<8x128xf32> to vector<8x32xf32>
    %126 = arith.negf %125 : vector<8x32xf32>
    %127 = math.exp %126 : vector<8x32xf32>
    %cst_57 = arith.constant 1.000000e+00 : f32
    %128 = vector.broadcast %cst_57 : f32 to vector<8x32xf32>
    %129 = arith.addf %128, %127 : vector<8x32xf32>
    %130 = arith.divf %128, %129 : vector<8x32xf32>
    %131 = vector.extract_strided_slice %124 {offsets = [0, 32], sizes = [8, 32], strides = [1, 1]} : vector<8x128xf32> to vector<8x32xf32>
    %132 = arith.negf %131 : vector<8x32xf32>
    %133 = math.exp %132 : vector<8x32xf32>
    %cst_58 = arith.constant 1.000000e+00 : f32
    %134 = vector.broadcast %cst_58 : f32 to vector<8x32xf32>
    %135 = arith.addf %134, %133 : vector<8x32xf32>
    %136 = arith.divf %134, %135 : vector<8x32xf32>
    %137 = vector.extract_strided_slice %124 {offsets = [0, 64], sizes = [8, 32], strides = [1, 1]} : vector<8x128xf32> to vector<8x32xf32>
    %138 = arith.negf %137 : vector<8x32xf32>
    %139 = math.exp %138 : vector<8x32xf32>
    %cst_59 = arith.constant 1.000000e+00 : f32
    %140 = vector.broadcast %cst_59 : f32 to vector<8x32xf32>
    %141 = arith.addf %140, %139 : vector<8x32xf32>
    %142 = arith.divf %140, %141 : vector<8x32xf32>
    %143 = vector.extract_strided_slice %124 {offsets = [0, 96], sizes = [8, 32], strides = [1, 1]} : vector<8x128xf32> to vector<8x32xf32>
    %144 = math.tanh %143 : vector<8x32xf32>
    %145 = arith.mulf %136, %119 : vector<8x32xf32>
    %146 = arith.mulf %130, %144 : vector<8x32xf32>
    %147 = arith.addf %145, %146 : vector<8x32xf32>
    %148 = math.tanh %147 : vector<8x32xf32>
    %149 = arith.mulf %142, %148 : vector<8x32xf32>
    %c0_60 = arith.constant 0 : index
    %c0_61 = arith.constant 0 : index
    %150 = vector.load %arg7[%c0_60, %c0_61] : memref<8x32xf32, #tpu.memory_space<vmem>>, vector<8x32xf32>
    tpu.vector_store %arg7[%c0_60, %c0_61], %147 {strides = array<i32>} : memref<8x32xf32, #tpu.memory_space<vmem>>, vector<8x32xf32>,
    %c0_62 = arith.constant 0 : index
    %c0_63 = arith.constant 0 : index
    %151 = vector.load %arg6[%c0_62, %c0_63] : memref<8x32xf32, #tpu.memory_space<vmem>>, vector<8x32xf32>
    tpu.vector_store %arg6[%c0_62, %c0_63], %149 {strides = array<i32>} : memref<8x32xf32, #tpu.memory_space<vmem>>, vector<8x32xf32>,
    %152 = arith.index_cast %c3_i32 : i32 to index
    %c0_64 = arith.constant 0 : index
    %c0_65 = arith.constant 0 : index
    %153 = vector.load %arg5[%152, %c0_64, %c0_65] : memref<8x8x32xf32, #tpu.memory_space<vmem>>, vector<1x8x32xf32>
    %154 = vector.shape_cast %153 : vector<1x8x32xf32> to vector<8x32xf32>
    %155 = vector.shape_cast %149 : vector<8x32xf32> to vector<1x8x32xf32>
    tpu.vector_store %arg5[%152, %c0_64, %c0_65], %155 {strides = array<i32>} : memref<8x8x32xf32, #tpu.memory_space<vmem>>, vector<1x8x32xf32>,
    %c4_i32 = arith.constant 4 : i32
    %c0_66 = arith.constant 0 : index
    %c0_67 = arith.constant 0 : index
    %156 = vector.load %arg6[%c0_66, %c0_67] : memref<8x32xf32, #tpu.memory_space<vmem>>, vector<8x32xf32>
    %c0_68 = arith.constant 0 : index
    %c0_69 = arith.constant 0 : index
    %157 = vector.load %arg7[%c0_68, %c0_69] : memref<8x32xf32, #tpu.memory_space<vmem>>, vector<8x32xf32>
    %158 = arith.index_cast %c4_i32 : i32 to index
    %c0_70 = arith.constant 0 : index
    %c0_71 = arith.constant 0 : index
    %159 = vector.load %arg2[%158, %c0_70, %c0_71] : memref<8x8x128xf32, #tpu.memory_space<vmem>>, vector<1x8x128xf32>
    %160 = vector.shape_cast %159 : vector<1x8x128xf32> to vector<8x128xf32>
    %cst_72 = arith.constant dense<0.000000e+00> : vector<8x128xf32>
    %161 = tpu.matmul %156, %3, %cst_72 {dimension_numbers = #tpu.dot_dimension_numbers<[1], [0], [0], [1], [0, 0, 1, 1], [], []>} : vector<8x32xf32>, vector<32x128xf32>, vector<8x128xf32> -> vector<8x128xf32>
    %162 = arith.addf %160, %161 : vector<8x128xf32>
    %163 = vector.extract_strided_slice %162 {offsets = [0, 0], sizes = [8, 32], strides = [1, 1]} : vector<8x128xf32> to vector<8x32xf32>
    %164 = arith.negf %163 : vector<8x32xf32>
    %165 = math.exp %164 : vector<8x32xf32>
    %cst_73 = arith.constant 1.000000e+00 : f32
    %166 = vector.broadcast %cst_73 : f32 to vector<8x32xf32>
    %167 = arith.addf %166, %165 : vector<8x32xf32>
    %168 = arith.divf %166, %167 : vector<8x32xf32>
    %169 = vector.extract_strided_slice %162 {offsets = [0, 32], sizes = [8, 32], strides = [1, 1]} : vector<8x128xf32> to vector<8x32xf32>
    %170 = arith.negf %169 : vector<8x32xf32>
    %171 = math.exp %170 : vector<8x32xf32>
    %cst_74 = arith.constant 1.000000e+00 : f32
    %172 = vector.broadcast %cst_74 : f32 to vector<8x32xf32>
    %173 = arith.addf %172, %171 : vector<8x32xf32>
    %174 = arith.divf %172, %173 : vector<8x32xf32>
    %175 = vector.extract_strided_slice %162 {offsets = [0, 64], sizes = [8, 32], strides = [1, 1]} : vector<8x128xf32> to vector<8x32xf32>
    %176 = arith.negf %175 : vector<8x32xf32>
    %177 = math.exp %176 : vector<8x32xf32>
    %cst_75 = arith.constant 1.000000e+00 : f32
    %178 = vector.broadcast %cst_75 : f32 to vector<8x32xf32>
    %179 = arith.addf %178, %177 : vector<8x32xf32>
    %180 = arith.divf %178, %179 : vector<8x32xf32>
    %181 = vector.extract_strided_slice %162 {offsets = [0, 96], sizes = [8, 32], strides = [1, 1]} : vector<8x128xf32> to vector<8x32xf32>
    %182 = math.tanh %181 : vector<8x32xf32>
    %183 = arith.mulf %174, %157 : vector<8x32xf32>
    %184 = arith.mulf %168, %182 : vector<8x32xf32>
    %185 = arith.addf %183, %184 : vector<8x32xf32>
    %186 = math.tanh %185 : vector<8x32xf32>
    %187 = arith.mulf %180, %186 : vector<8x32xf32>
    %c0_76 = arith.constant 0 : index
    %c0_77 = arith.constant 0 : index
    %188 = vector.load %arg7[%c0_76, %c0_77] : memref<8x32xf32, #tpu.memory_space<vmem>>, vector<8x32xf32>
    tpu.vector_store %arg7[%c0_76, %c0_77], %185 {strides = array<i32>} : memref<8x32xf32, #tpu.memory_space<vmem>>, vector<8x32xf32>,
    %c0_78 = arith.constant 0 : index
    %c0_79 = arith.constant 0 : index
    %189 = vector.load %arg6[%c0_78, %c0_79] : memref<8x32xf32, #tpu.memory_space<vmem>>, vector<8x32xf32>
    tpu.vector_store %arg6[%c0_78, %c0_79], %187 {strides = array<i32>} : memref<8x32xf32, #tpu.memory_space<vmem>>, vector<8x32xf32>,
    %190 = arith.index_cast %c4_i32 : i32 to index
    %c0_80 = arith.constant 0 : index
    %c0_81 = arith.constant 0 : index
    %191 = vector.load %arg5[%190, %c0_80, %c0_81] : memref<8x8x32xf32, #tpu.memory_space<vmem>>, vector<1x8x32xf32>
    %192 = vector.shape_cast %191 : vector<1x8x32xf32> to vector<8x32xf32>
    %193 = vector.shape_cast %187 : vector<8x32xf32> to vector<1x8x32xf32>
    tpu.vector_store %arg5[%190, %c0_80, %c0_81], %193 {strides = array<i32>} : memref<8x8x32xf32, #tpu.memory_space<vmem>>, vector<1x8x32xf32>,
    %c5_i32 = arith.constant 5 : i32
    %c0_82 = arith.constant 0 : index
    %c0_83 = arith.constant 0 : index
    %194 = vector.load %arg6[%c0_82, %c0_83] : memref<8x32xf32, #tpu.memory_space<vmem>>, vector<8x32xf32>
    %c0_84 = arith.constant 0 : index
    %c0_85 = arith.constant 0 : index
    %195 = vector.load %arg7[%c0_84, %c0_85] : memref<8x32xf32, #tpu.memory_space<vmem>>, vector<8x32xf32>
    %196 = arith.index_cast %c5_i32 : i32 to index
    %c0_86 = arith.constant 0 : index
    %c0_87 = arith.constant 0 : index
    %197 = vector.load %arg2[%196, %c0_86, %c0_87] : memref<8x8x128xf32, #tpu.memory_space<vmem>>, vector<1x8x128xf32>
    %198 = vector.shape_cast %197 : vector<1x8x128xf32> to vector<8x128xf32>
    %cst_88 = arith.constant dense<0.000000e+00> : vector<8x128xf32>
    %199 = tpu.matmul %194, %3, %cst_88 {dimension_numbers = #tpu.dot_dimension_numbers<[1], [0], [0], [1], [0, 0, 1, 1], [], []>} : vector<8x32xf32>, vector<32x128xf32>, vector<8x128xf32> -> vector<8x128xf32>
    %200 = arith.addf %198, %199 : vector<8x128xf32>
    %201 = vector.extract_strided_slice %200 {offsets = [0, 0], sizes = [8, 32], strides = [1, 1]} : vector<8x128xf32> to vector<8x32xf32>
    %202 = arith.negf %201 : vector<8x32xf32>
    %203 = math.exp %202 : vector<8x32xf32>
    %cst_89 = arith.constant 1.000000e+00 : f32
    %204 = vector.broadcast %cst_89 : f32 to vector<8x32xf32>
    %205 = arith.addf %204, %203 : vector<8x32xf32>
    %206 = arith.divf %204, %205 : vector<8x32xf32>
    %207 = vector.extract_strided_slice %200 {offsets = [0, 32], sizes = [8, 32], strides = [1, 1]} : vector<8x128xf32> to vector<8x32xf32>
    %208 = arith.negf %207 : vector<8x32xf32>
    %209 = math.exp %208 : vector<8x32xf32>
    %cst_90 = arith.constant 1.000000e+00 : f32
    %210 = vector.broadcast %cst_90 : f32 to vector<8x32xf32>
    %211 = arith.addf %210, %209 : vector<8x32xf32>
    %212 = arith.divf %210, %211 : vector<8x32xf32>
    %213 = vector.extract_strided_slice %200 {offsets = [0, 64], sizes = [8, 32], strides = [1, 1]} : vector<8x128xf32> to vector<8x32xf32>
    %214 = arith.negf %213 : vector<8x32xf32>
    %215 = math.exp %214 : vector<8x32xf32>
    %cst_91 = arith.constant 1.000000e+00 : f32
    %216 = vector.broadcast %cst_91 : f32 to vector<8x32xf32>
    %217 = arith.addf %216, %215 : vector<8x32xf32>
    %218 = arith.divf %216, %217 : vector<8x32xf32>
    %219 = vector.extract_strided_slice %200 {offsets = [0, 96], sizes = [8, 32], strides = [1, 1]} : vector<8x128xf32> to vector<8x32xf32>
    %220 = math.tanh %219 : vector<8x32xf32>
    %221 = arith.mulf %212, %195 : vector<8x32xf32>
    %222 = arith.mulf %206, %220 : vector<8x32xf32>
    %223 = arith.addf %221, %222 : vector<8x32xf32>
    %224 = math.tanh %223 : vector<8x32xf32>
    %225 = arith.mulf %218, %224 : vector<8x32xf32>
    %c0_92 = arith.constant 0 : index
    %c0_93 = arith.constant 0 : index
    %226 = vector.load %arg7[%c0_92, %c0_93] : memref<8x32xf32, #tpu.memory_space<vmem>>, vector<8x32xf32>
    tpu.vector_store %arg7[%c0_92, %c0_93], %223 {strides = array<i32>} : memref<8x32xf32, #tpu.memory_space<vmem>>, vector<8x32xf32>,
    %c0_94 = arith.constant 0 : index
    %c0_95 = arith.constant 0 : index
    %227 = vector.load %arg6[%c0_94, %c0_95] : memref<8x32xf32, #tpu.memory_space<vmem>>, vector<8x32xf32>
    tpu.vector_store %arg6[%c0_94, %c0_95], %225 {strides = array<i32>} : memref<8x32xf32, #tpu.memory_space<vmem>>, vector<8x32xf32>,
    %228 = arith.index_cast %c5_i32 : i32 to index
    %c0_96 = arith.constant 0 : index
    %c0_97 = arith.constant 0 : index
    %229 = vector.load %arg5[%228, %c0_96, %c0_97] : memref<8x8x32xf32, #tpu.memory_space<vmem>>, vector<1x8x32xf32>
    %230 = vector.shape_cast %229 : vector<1x8x32xf32> to vector<8x32xf32>
    %231 = vector.shape_cast %225 : vector<8x32xf32> to vector<1x8x32xf32>
    tpu.vector_store %arg5[%228, %c0_96, %c0_97], %231 {strides = array<i32>} : memref<8x8x32xf32, #tpu.memory_space<vmem>>, vector<1x8x32xf32>,
    %c6_i32 = arith.constant 6 : i32
    %c0_98 = arith.constant 0 : index
    %c0_99 = arith.constant 0 : index
    %232 = vector.load %arg6[%c0_98, %c0_99] : memref<8x32xf32, #tpu.memory_space<vmem>>, vector<8x32xf32>
    %c0_100 = arith.constant 0 : index
    %c0_101 = arith.constant 0 : index
    %233 = vector.load %arg7[%c0_100, %c0_101] : memref<8x32xf32, #tpu.memory_space<vmem>>, vector<8x32xf32>
    %234 = arith.index_cast %c6_i32 : i32 to index
    %c0_102 = arith.constant 0 : index
    %c0_103 = arith.constant 0 : index
    %235 = vector.load %arg2[%234, %c0_102, %c0_103] : memref<8x8x128xf32, #tpu.memory_space<vmem>>, vector<1x8x128xf32>
    %236 = vector.shape_cast %235 : vector<1x8x128xf32> to vector<8x128xf32>
    %cst_104 = arith.constant dense<0.000000e+00> : vector<8x128xf32>
    %237 = tpu.matmul %232, %3, %cst_104 {dimension_numbers = #tpu.dot_dimension_numbers<[1], [0], [0], [1], [0, 0, 1, 1], [], []>} : vector<8x32xf32>, vector<32x128xf32>, vector<8x128xf32> -> vector<8x128xf32>
    %238 = arith.addf %236, %237 : vector<8x128xf32>
    %239 = vector.extract_strided_slice %238 {offsets = [0, 0], sizes = [8, 32], strides = [1, 1]} : vector<8x128xf32> to vector<8x32xf32>
    %240 = arith.negf %239 : vector<8x32xf32>
    %241 = math.exp %240 : vector<8x32xf32>
    %cst_105 = arith.constant 1.000000e+00 : f32
    %242 = vector.broadcast %cst_105 : f32 to vector<8x32xf32>
    %243 = arith.addf %242, %241 : vector<8x32xf32>
    %244 = arith.divf %242, %243 : vector<8x32xf32>
    %245 = vector.extract_strided_slice %238 {offsets = [0, 32], sizes = [8, 32], strides = [1, 1]} : vector<8x128xf32> to vector<8x32xf32>
    %246 = arith.negf %245 : vector<8x32xf32>
    %247 = math.exp %246 : vector<8x32xf32>
    %cst_106 = arith.constant 1.000000e+00 : f32
    %248 = vector.broadcast %cst_106 : f32 to vector<8x32xf32>
    %249 = arith.addf %248, %247 : vector<8x32xf32>
    %250 = arith.divf %248, %249 : vector<8x32xf32>
    %251 = vector.extract_strided_slice %238 {offsets = [0, 64], sizes = [8, 32], strides = [1, 1]} : vector<8x128xf32> to vector<8x32xf32>
    %252 = arith.negf %251 : vector<8x32xf32>
    %253 = math.exp %252 : vector<8x32xf32>
    %cst_107 = arith.constant 1.000000e+00 : f32
    %254 = vector.broadcast %cst_107 : f32 to vector<8x32xf32>
    %255 = arith.addf %254, %253 : vector<8x32xf32>
    %256 = arith.divf %254, %255 : vector<8x32xf32>
    %257 = vector.extract_strided_slice %238 {offsets = [0, 96], sizes = [8, 32], strides = [1, 1]} : vector<8x128xf32> to vector<8x32xf32>
    %258 = math.tanh %257 : vector<8x32xf32>
    %259 = arith.mulf %250, %233 : vector<8x32xf32>
    %260 = arith.mulf %244, %258 : vector<8x32xf32>
    %261 = arith.addf %259, %260 : vector<8x32xf32>
    %262 = math.tanh %261 : vector<8x32xf32>
    %263 = arith.mulf %256, %262 : vector<8x32xf32>
    %c0_108 = arith.constant 0 : index
    %c0_109 = arith.constant 0 : index
    %264 = vector.load %arg7[%c0_108, %c0_109] : memref<8x32xf32, #tpu.memory_space<vmem>>, vector<8x32xf32>
    tpu.vector_store %arg7[%c0_108, %c0_109], %261 {strides = array<i32>} : memref<8x32xf32, #tpu.memory_space<vmem>>, vector<8x32xf32>,
    %c0_110 = arith.constant 0 : index
    %c0_111 = arith.constant 0 : index
    %265 = vector.load %arg6[%c0_110, %c0_111] : memref<8x32xf32, #tpu.memory_space<vmem>>, vector<8x32xf32>
    tpu.vector_store %arg6[%c0_110, %c0_111], %263 {strides = array<i32>} : memref<8x32xf32, #tpu.memory_space<vmem>>, vector<8x32xf32>,
    %266 = arith.index_cast %c6_i32 : i32 to index
    %c0_112 = arith.constant 0 : index
    %c0_113 = arith.constant 0 : index
    %267 = vector.load %arg5[%266, %c0_112, %c0_113] : memref<8x8x32xf32, #tpu.memory_space<vmem>>, vector<1x8x32xf32>
    %268 = vector.shape_cast %267 : vector<1x8x32xf32> to vector<8x32xf32>
    %269 = vector.shape_cast %263 : vector<8x32xf32> to vector<1x8x32xf32>
    tpu.vector_store %arg5[%266, %c0_112, %c0_113], %269 {strides = array<i32>} : memref<8x8x32xf32, #tpu.memory_space<vmem>>, vector<1x8x32xf32>,
    %c7_i32 = arith.constant 7 : i32
    %c0_114 = arith.constant 0 : index
    %c0_115 = arith.constant 0 : index
    %270 = vector.load %arg6[%c0_114, %c0_115] : memref<8x32xf32, #tpu.memory_space<vmem>>, vector<8x32xf32>
    %c0_116 = arith.constant 0 : index
    %c0_117 = arith.constant 0 : index
    %271 = vector.load %arg7[%c0_116, %c0_117] : memref<8x32xf32, #tpu.memory_space<vmem>>, vector<8x32xf32>
    %272 = arith.index_cast %c7_i32 : i32 to index
    %c0_118 = arith.constant 0 : index
    %c0_119 = arith.constant 0 : index
    %273 = vector.load %arg2[%272, %c0_118, %c0_119] : memref<8x8x128xf32, #tpu.memory_space<vmem>>, vector<1x8x128xf32>
    %274 = vector.shape_cast %273 : vector<1x8x128xf32> to vector<8x128xf32>
    %cst_120 = arith.constant dense<0.000000e+00> : vector<8x128xf32>
    %275 = tpu.matmul %270, %3, %cst_120 {dimension_numbers = #tpu.dot_dimension_numbers<[1], [0], [0], [1], [0, 0, 1, 1], [], []>} : vector<8x32xf32>, vector<32x128xf32>, vector<8x128xf32> -> vector<8x128xf32>
    %276 = arith.addf %274, %275 : vector<8x128xf32>
    %277 = vector.extract_strided_slice %276 {offsets = [0, 0], sizes = [8, 32], strides = [1, 1]} : vector<8x128xf32> to vector<8x32xf32>
    %278 = arith.negf %277 : vector<8x32xf32>
    %279 = math.exp %278 : vector<8x32xf32>
    %cst_121 = arith.constant 1.000000e+00 : f32
    %280 = vector.broadcast %cst_121 : f32 to vector<8x32xf32>
    %281 = arith.addf %280, %279 : vector<8x32xf32>
    %282 = arith.divf %280, %281 : vector<8x32xf32>
    %283 = vector.extract_strided_slice %276 {offsets = [0, 32], sizes = [8, 32], strides = [1, 1]} : vector<8x128xf32> to vector<8x32xf32>
    %284 = arith.negf %283 : vector<8x32xf32>
    %285 = math.exp %284 : vector<8x32xf32>
    %cst_122 = arith.constant 1.000000e+00 : f32
    %286 = vector.broadcast %cst_122 : f32 to vector<8x32xf32>
    %287 = arith.addf %286, %285 : vector<8x32xf32>
    %288 = arith.divf %286, %287 : vector<8x32xf32>
    %289 = vector.extract_strided_slice %276 {offsets = [0, 64], sizes = [8, 32], strides = [1, 1]} : vector<8x128xf32> to vector<8x32xf32>
    %290 = arith.negf %289 : vector<8x32xf32>
    %291 = math.exp %290 : vector<8x32xf32>
    %cst_123 = arith.constant 1.000000e+00 : f32
    %292 = vector.broadcast %cst_123 : f32 to vector<8x32xf32>
    %293 = arith.addf %292, %291 : vector<8x32xf32>
    %294 = arith.divf %292, %293 : vector<8x32xf32>
    %295 = vector.extract_strided_slice %276 {offsets = [0, 96], sizes = [8, 32], strides = [1, 1]} : vector<8x128xf32> to vector<8x32xf32>
    %296 = math.tanh %295 : vector<8x32xf32>
    %297 = arith.mulf %288, %271 : vector<8x32xf32>
    %298 = arith.mulf %282, %296 : vector<8x32xf32>
    %299 = arith.addf %297, %298 : vector<8x32xf32>
    %300 = math.tanh %299 : vector<8x32xf32>
    %301 = arith.mulf %294, %300 : vector<8x32xf32>
    %c0_124 = arith.constant 0 : index
    %c0_125 = arith.constant 0 : index
    %302 = vector.load %arg7[%c0_124, %c0_125] : memref<8x32xf32, #tpu.memory_space<vmem>>, vector<8x32xf32>
    tpu.vector_store %arg7[%c0_124, %c0_125], %299 {strides = array<i32>} : memref<8x32xf32, #tpu.memory_space<vmem>>, vector<8x32xf32>,
    %c0_126 = arith.constant 0 : index
    %c0_127 = arith.constant 0 : index
    %303 = vector.load %arg6[%c0_126, %c0_127] : memref<8x32xf32, #tpu.memory_space<vmem>>, vector<8x32xf32>
    tpu.vector_store %arg6[%c0_126, %c0_127], %301 {strides = array<i32>} : memref<8x32xf32, #tpu.memory_space<vmem>>, vector<8x32xf32>,
    %304 = arith.index_cast %c7_i32 : i32 to index
    %c0_128 = arith.constant 0 : index
    %c0_129 = arith.constant 0 : index
    %305 = vector.load %arg5[%304, %c0_128, %c0_129] : memref<8x8x32xf32, #tpu.memory_space<vmem>>, vector<1x8x32xf32>
    %306 = vector.shape_cast %305 : vector<1x8x32xf32> to vector<8x32xf32>
    %307 = vector.shape_cast %301 : vector<8x32xf32> to vector<1x8x32xf32>
    tpu.vector_store %arg5[%304, %c0_128, %c0_129], %307 {strides = array<i32>} : memref<8x8x32xf32, #tpu.memory_space<vmem>>, vector<1x8x32xf32>,
    %c8_i32 = arith.constant 8 : i32
    return
  }
  func.func @transform_0(%arg0: i32, %arg1: i32) -> (i32, i32, i32) {
    %c0_i32 = arith.constant 0 : i32
    %c0_i32_0 = arith.constant 0 : i32
    return %arg1, %arg0, %c0_i32 : i32, i32, i32
  }
  func.func @transform_1(%arg0: i32, %arg1: i32) -> (i32, i32) {
    %c0_i32 = arith.constant 0 : i32
    %c0_i32_0 = arith.constant 0 : i32
    return %arg0, %c0_i32 : i32, i32
  }
  func.func @transform_2(%arg0: i32, %arg1: i32) -> (i32, i32) {
    %c0_i32 = arith.constant 0 : i32
    %c0_i32_0 = arith.constant 0 : i32
    %c0_i32_1 = arith.constant 0 : i32
    return %c0_i32, %c0_i32_0 : i32, i32
  }
  func.func @transform_3(%arg0: i32, %arg1: i32) -> (i32, i32, i32) {
    %c0_i32 = arith.constant 0 : i32
    %c0_i32_0 = arith.constant 0 : i32
    return %arg1, %arg0, %c0_i32 : i32, i32, i32
  }
}

</mosaic_0001>

<bundles_post_ra>
// kernel: tpu_custom_call.1
= control target key start
LH: loop header
LB: loop body
LE: loop exit
PB: predicated region body
PF: predicated region fallthrough
CT: control target
= control target key end

     0   :  { %8 = vsyncpa [#allocation5], 0  ;;  %s1555_s0 = inlined_call_operand.hbm [shape: f32[8,8,128], index: 0, kind: input, shape index: {}]   ;;  %s1556_s1 = inlined_call_operand.hbm [shape: f32[8,32], index: 1, kind: input, shape index: {}]   ;;  %s1557_s2 = inlined_call_operand.hbm [shape: f32[32,128], index: 2, kind: input, shape index: {}]   ;;  %s1558_s3 = inlined_call_operand.hbm [shape: f32[8,8,32], index: 3, kind: output, shape index: {}]  }
   0x1   :  { %9 = vsyncpa [#allocation8], 0 }
   0x2   :  { %10 = vsyncpa [#allocation6], 0  ;;  %s1332_s12 = smov [#allocation7]   ;;  %s1333_s14 = smov [#allocation4]  }
   0x3   :  { %s29_s13 = sshll.u32 %s1332_s12, 4  ;;  %s16_s15 = sshll.u32 %s1333_s14, 4  ;;  %s30_s13 = int_to_ptr.vmem [resolvable:$true] %s29_s13  ;;  %s17_s15 = int_to_ptr.vmem [resolvable:$true] %s16_s15 }
   0x4   :  { %s1254_s16 = scalar_lea.vmem %s30_s13, 128  ;;  %p1259_p1 = scmp.lt.s32.totalorder %s30_s13, %s30_s13 }
   0x5   :  { %p1255_p0 = scmp.ne.s32.totalorder %s30_s13, %s1254_s16  ;;  %p1260_p2 = scmp.lt.s32.totalorder %s1254_s16, %s1254_s16 }
   0x7   :  { %p1261_p3 = por %p1260_p2, %p1259_p1 }
   0x9   :  { %p1262_p4 = pnand %p1261_p3, %p1255_p0 }
   0xb   :  { %1265 = shalt.err (!%p1262_p4)
}
   0xc   :  { %32 = dma.hbm_to_vmem [thread:$0]  %s1556_s1, 128, %s30_s13, [#allocation8]  }
   0xd   :  { %s1274_s19 = scalar_lea.vmem %s17_s15, 1024  ;;  %p1279_p6 = scmp.lt.s32.totalorder %s17_s15, %s17_s15 }
   0xe   :  { %p1275_p5 = scmp.ne.s32.totalorder %s17_s15, %s1274_s19  ;;  %p1280_p7 = scmp.lt.s32.totalorder %s1274_s19, %s1274_s19 }
  0x10   :  { %p1281_p8 = por %p1280_p7, %p1279_p6 }
  0x12   :  { %p1282_p9 = pnand %p1281_p8, %p1275_p5 }
  0x14   :  { %1285 = shalt.err (!%p1282_p9)
}
  0x15   :  { %s1334_s20 = smov 128   ;;  %s1335_s21 = smov 8  }
  0x16   :  { %22 = dma.hbm_to_vmem [thread:$0]  %s1555_s0, 1024, %s17_s15, [#allocation5], %s1334_s20, %s1334_s20, %s1335_s21  }
  0x17   :  { %s1336_s24 = smov [#allocation9]  }
  0x18   :  { %s38_s25 = sshll.u32 %s1336_s24, 4  ;;  %s39_s25 = int_to_ptr.vmem [resolvable:$true] %s38_s25 }
  0x19   :  { %s1294_s1 = scalar_lea.vmem %s39_s25, 512  ;;  %p1299_p11 = scmp.lt.s32.totalorder %s39_s25, %s39_s25 }
  0x1a   :  { %p1295_p10 = scmp.ne.s32.totalorder %s39_s25, %s1294_s1  ;;  %p1300_p12 = scmp.lt.s32.totalorder %s1294_s1, %s1294_s1 }
  0x1c   :  { %p1301_p13 = por %p1300_p12, %p1299_p11 }
  0x1e   :  { %p1302_p0 = pnand %p1301_p13, %p1295_p10 }
  0x20   :  { %1305 = shalt.err (!%p1302_p0)
}
  0x21   :  { %44 = dma.hbm_to_vmem [thread:$0]  %s1557_s2, 512, %s39_s25, [#allocation8], %s1334_s20, %s1334_s20, %s1335_s21  }
  0x22   :  { %1326 = dma.done.wait [#allocation5], 1024  }
  0x23   :  { %1327 = vsyncadd [#allocation5], 4294966272 }
  0x24   :  { %1328 = dma.done.wait [#allocation8], 640  }
  0x25   :  { %1329 = vsyncadd [#allocation8], 4294966656  ;;  %vm59_vm0 = vcmask 261120   ;;  %v1337_v0 = vmov 0.0   ;;  %vm1338_vm1 = vmmov 0   ;;  %v1386_v1 = vld [vmem:[#allocation9 + $0x18] sm:$0xff] }
  0x26   :  { %1083 = vmatprep.subr.mxu0 %v1337_v0  ;;  %1091 = vmatprep.mubr.msk.f32.mxu0 %vm1338_vm1, %v1337_v0  ;;  %61 = vst.msk [vmem:[#allocation3] sm:$0xff] %vm59_vm0, %v1337_v0  ;;  %v1388_v2 = vld [vmem:[#allocation9 + $0x10] sm:$0xff]  ;;  %v58_v3 = vld [vmem:[#allocation7] sm:$0xff]  ;;  %v1393_v4 = vld [vmem:[#allocation9 + $0x8] sm:$0xff]  ;;  %s1339_s0 = smov 32   ;;  %s1340_s2 = smov 96  }
  0x27   :  { %1094 = vmatprep.subr.mxu1 %v1337_v0  ;;  %1102 = vmatprep.mubr.msk.f32.mxu1 %vm1338_vm1, %v1337_v0  ;;  %60 = vst.msk [vmem:[#allocation2] sm:$0xff] %vm59_vm0, %v58_v3  ;;  %v1400_v5 = vld [vmem:[#allocation9] sm:$0xff]  ;;  %v68_v7 = vld [vmem:[#allocation4] sm:$0xff]  ;;  %s1341_s28 = smov 64   ;;  %v304_v52 = vld [vmem:[#allocation4 + $0x10] sm:$0xff]  ;;  %s1342_s29 = smov [#allocation10]  }
  0x28   :  { %1084 = vmatpush3.msra.mxu0 %v1386_v1  ;;  %1095 = vmatpush3.msra.mxu1 %v1386_v1  ;;  %v186_v30 = vld [vmem:[#allocation4 + $0x8] sm:$0xff]  ;;  %s1014_s30 = sshll.u32 %s1342_s29, 4  ;;  %s1015_s30 = int_to_ptr.vmem [resolvable:$true] %s1014_s30 }
  0x29   :  { %1085 = vmatprep.subr.mxu0 %v1337_v0  ;;  %1096 = vmatprep.subr.mxu1 %v1337_v0  ;;  %s1306_s4 = scalar_lea.vmem %s1015_s30, 1024  ;;  %p1311_p2 = scmp.lt.s32.totalorder %s1015_s30, %s1015_s30 }
  0x2a   :  { %1086 = vmatpush3.msra.mxu0 %v1388_v2  ;;  %1097 = vmatpush3.msra.mxu1 %v1388_v2  ;;  %p1307_p1 = scmp.ne.s32.totalorder %s1015_s30, %s1306_s4  ;;  %p1312_p3 = scmp.lt.s32.totalorder %s1306_s4, %s1306_s4 }
  0x2b   :  { %1087 = vmatprep.subr.mxu0 %v1337_v0  ;;  %1098 = vmatprep.subr.mxu1 %v1337_v0 }
  0x2c   :  { %1088 = vmatpush3.msra.mxu0 %v1393_v4  ;;  %1099 = vmatpush3.msra.mxu1 %v1393_v4  ;;  %p1313_p4 = por %p1312_p3, %p1311_p2 }
  0x2d   :  { %1089 = vmatprep.subr.mxu0 %v1337_v0  ;;  %1100 = vmatprep.subr.mxu1 %v1337_v0  ;;  %v67_v12 = vld [vmem:[#allocation3] sm:$0xff] }
  0x2e   :  { %1090 = vmatpush3.msra.mxu0 %v1400_v5  ;;  %1101 = vmatpush3.msra.mxu1 %v1400_v5  ;;  %v66_v6 = vld [vmem:[#allocation2] sm:$0xff]  ;;  %p1314_p5 = pnand %p1313_p4, %p1307_p1 }
  0x2f   :  { %1105 = vmatprep.subr.mxu0 %v1337_v0  ;;  %1116 = vmatprep.subr.mxu1 %v1337_v0 }
  0x30   :  { %1092 = vmatmul.mubr.msk.f32.vlgmr.msra.gmra.mxu0 %vm59_vm0, %v66_v6 }
  0x31   :  { %1106 = vmatpush3.msra.mxu0 %v1386_v1  ;;  %1113 = vmatprep.mubr.msk.f32.mxu0 %vm1338_vm1, %v1337_v0 }
  0x32   :  { %1107 = vmatprep.subr.mxu0 %v1337_v0 }
  0x33   :  { %1108 = vmatpush3.msra.mxu0 %v1388_v2 }
  0x34   :  { %1109 = vmatprep.subr.mxu0 %v1337_v0 }
  0x35   :  { %1110 = vmatpush3.msra.mxu0 %v1393_v4 }
  0x36   :  { %1111 = vmatprep.subr.mxu0 %v1337_v0 }
  0x37   :  { %1112 = vmatpush3.msra.mxu0 %v1400_v5 }
  0x38   :  { %1127 = vmatprep.subr.mxu0 %v1337_v0 }
  0xf0   :  { %v139_v8 = vpop.f32.mrf.mxu0 }
  0xf1   :  { %v143_v9 = vadd.f32 %v139_v8, %v68_v7 }
  0xf2   :  { %v1093_v10 = vpop.f32.mrf.mxu0 }
  0xf3   :  { %1182 = vtanh.f32 %v143_v9  ;;  %v1028_v13 = vmul.f32 -1.442695, %v143_v9 }
  0xf5   :  { %1184 = vpow2.f32 %v1028_v13 }
 0x100   :  { %v1183_v11 = vpop.eup %1182 }
 0x101   :  { %157 = vrot.lane.b32.xlu0 %v1183_v11, %s1339_s0 }
 0x102   :  { %v1185_v14 = vpop.eup %1184 }
 0x103   :  { %v147_v15 = vadd.f32 1.0, %v1185_v14 }
 0x105   :  { %152 = vrot.lane.b32.xlu0 %v67_v12, %s1339_s0  ;;  %1186 = vrcp.f32 %v147_v15  ;;  %v422_v15 = vld [vmem:[#allocation4 + $0x18] sm:$0xff] }
 0x112   :  { %v1187_v16 = vpop.eup %1186 }
 0x173   :  { %v158_v17 = vpop.permute.xlu0 %157 }
 0x174   :  { %v160_v18 = vmul.f32 %v1187_v16, %v158_v17 }
 0x176   :  { %162 = vrot.lane.b32.xlu1 %v160_v18, %s1339_s0 }
 0x177   :  { %v153_v19 = vpop.permute.xlu0 %152 }
 0x178   :  { %v155_v20 = vmul.f32 %v1187_v16, %v153_v19 }
 0x1e8   :  { %v163_v21 = vpop.permute.xlu1 %162 }
 0x1e9   :  { %v165_v22 = vadd.f32 %v163_v21, %v155_v20 }
 0x1eb   :  { %1188 = vtanh.f32 %v165_v22 }
 0x1f8   :  { %v1189_v23 = vpop.eup %1188 }
 0x1f9   :  { %168 = vrot.lane.b32.xlu1 %v1189_v23, %s1339_s0 }
 0x1fd   :  { %173 = vrot.lane.b32.xlu1 %v165_v22, %s1340_s2 }
 0x26b   :  { %v169_v24 = vpop.permute.xlu1 %168 }
 0x26c   :  { %v171_v25 = vmul.f32 %v1187_v16, %v169_v24 }
 0x26e   :  { %178 = vrot.lane.b32.xlu0 %v171_v25, %s1341_s28 }
 0x26f   :  { %v174_v26 = vpop.permute.xlu1 %173 }
 0x270   :  { %176 = vst.msk [vmem:[#allocation3] sm:$0xff] %vm59_vm0, %v174_v26 }
 0x277   :  { %v184_v27 = vld [vmem:[#allocation3] sm:$0xff] }
 0x278   :  { %269 = vrot.lane.b32.xlu1 %v184_v27, %s1339_s0 }
 0x2e0   :  { %v179_v28 = vpop.permute.xlu0 %178 }
 0x2e1   :  { %181 = vst.msk [vmem:[#allocation2] sm:$0xff] %vm59_vm0, %v179_v28  ;;  %182 = vst.msk [vmem:[#allocation10] sm:$0xff] %vm59_vm0, %v179_v28 }
 0x2e8   :  { %v183_v29 = vld [vmem:[#allocation2] sm:$0xff] }
 0x2e9   :  { %1103 = vmatmul.mubr.msk.f32.vlgmr.msra.gmra.mxu1 %vm59_vm0, %v183_v29 }
 0x2ea   :  { %1117 = vmatpush3.msra.mxu1 %v1386_v1  ;;  %1124 = vmatprep.mubr.msk.f32.mxu1 %vm1338_vm1, %v1337_v0  ;;  %v270_v41 = vpop.permute.xlu1 %269 }
 0x2eb   :  { %1118 = vmatprep.subr.mxu1 %v1337_v0 }
 0x2ec   :  { %1119 = vmatpush3.msra.mxu1 %v1388_v2 }
 0x2ed   :  { %1120 = vmatprep.subr.mxu1 %v1337_v0 }
 0x2ee   :  { %1121 = vmatpush3.msra.mxu1 %v1393_v4 }
 0x2ef   :  { %1122 = vmatprep.subr.mxu1 %v1337_v0 }
 0x2f0   :  { %1123 = vmatpush3.msra.mxu1 %v1400_v5 }
 0x2f1   :  { %1138 = vmatprep.subr.mxu1 %v1337_v0 }
 0x3a9   :  { %v256_v31 = vpop.f32.mrf.mxu1 }
 0x3aa   :  { %v260_v32 = vadd.f32 %v256_v31, %v186_v30 }
 0x3ab   :  { %v1104_v33 = vpop.f32.mrf.mxu1 }
 0x3ac   :  { %1190 = vtanh.f32 %v260_v32  ;;  %v1030_v35 = vmul.f32 -1.442695, %v260_v32 }
 0x3ae   :  { %1192 = vpow2.f32 %v1030_v35 }
 0x3b9   :  { %v1191_v34 = vpop.eup %1190 }
 0x3ba   :  { %274 = vrot.lane.b32.xlu0 %v1191_v34, %s1339_s0 }
 0x3bb   :  { %v1193_v36 = vpop.eup %1192 }
 0x3bc   :  { %v264_v37 = vadd.f32 1.0, %v1193_v36 }
 0x3be   :  { %1194 = vrcp.f32 %v264_v37  ;;  %v540_v37 = vld [vmem:[#allocation4 + $0x20] sm:$0xff] }
 0x3cb   :  { %v1195_v38 = vpop.eup %1194 }
 0x3cc   :  { %v272_v42 = vmul.f32 %v1195_v38, %v270_v41 }
 0x42c   :  { %v275_v39 = vpop.permute.xlu0 %274 }
 0x42d   :  { %v277_v40 = vmul.f32 %v1195_v38, %v275_v39 }
 0x42f   :  { %279 = vrot.lane.b32.xlu0 %v277_v40, %s1339_s0 }
 0x4a1   :  { %v280_v43 = vpop.permute.xlu0 %279 }
 0x4a2   :  { %v282_v44 = vadd.f32 %v280_v43, %v272_v42 }
 0x4a4   :  { %1196 = vtanh.f32 %v282_v44 }
 0x4b1   :  { %v1197_v45 = vpop.eup %1196 }
 0x4b2   :  { %285 = vrot.lane.b32.xlu1 %v1197_v45, %s1339_s0 }
 0x4b6   :  { %290 = vrot.lane.b32.xlu1 %v282_v44, %s1340_s2 }
 0x524   :  { %v286_v46 = vpop.permute.xlu1 %285 }
 0x525   :  { %v288_v47 = vmul.f32 %v1195_v38, %v286_v46 }
 0x527   :  { %295 = vrot.lane.b32.xlu0 %v288_v47, %s1341_s28 }
 0x528   :  { %v291_v48 = vpop.permute.xlu1 %290 }
 0x529   :  { %293 = vst.msk [vmem:[#allocation3] sm:$0xff] %vm59_vm0, %v291_v48 }
 0x530   :  { %v302_v49 = vld [vmem:[#allocation3] sm:$0xff] }
 0x531   :  { %387 = vrot.lane.b32.xlu1 %v302_v49, %s1339_s0 }
 0x599   :  { %v296_v50 = vpop.permute.xlu0 %295 }
 0x59a   :  { %298 = vst.msk [vmem:[#allocation2] sm:$0xff] %vm59_vm0, %v296_v50  ;;  %300 = vst.msk [vmem:[#allocation10 + $0x8] sm:$0xff] %vm59_vm0, %v296_v50 }
 0x5a1   :  { %v301_v51 = vld [vmem:[#allocation2] sm:$0xff] }
 0x5a2   :  { %1114 = vmatmul.mubr.msk.f32.vlgmr.msra.gmra.mxu0 %vm59_vm0, %v301_v51 }
 0x5a3   :  { %1128 = vmatpush3.msra.mxu0 %v1386_v1  ;;  %1135 = vmatprep.mubr.msk.f32.mxu0 %vm1338_vm1, %v1337_v0  ;;  %v388_v63 = vpop.permute.xlu1 %387 }
 0x5a4   :  { %1129 = vmatprep.subr.mxu0 %v1337_v0 }
 0x5a5   :  { %1130 = vmatpush3.msra.mxu0 %v1388_v2 }
 0x5a6   :  { %1131 = vmatprep.subr.mxu0 %v1337_v0 }
 0x5a7   :  { %1132 = vmatpush3.msra.mxu0 %v1393_v4 }
 0x5a8   :  { %1133 = vmatprep.subr.mxu0 %v1337_v0 }
 0x5a9   :  { %1134 = vmatpush3.msra.mxu0 %v1400_v5 }
 0x5aa   :  { %1149 = vmatprep.subr.mxu0 %v1337_v0 }
 0x662   :  { %v374_v53 = vpop.f32.mrf.mxu0 }
 0x663   :  { %v378_v54 = vadd.f32 %v374_v53, %v304_v52 }
 0x664   :  { %v1115_v55 = vpop.f32.mrf.mxu0 }
 0x665   :  { %1198 = vtanh.f32 %v378_v54  ;;  %v1032_v57 = vmul.f32 -1.442695, %v378_v54 }
 0x667   :  { %1200 = vpow2.f32 %v1032_v57 }
 0x672   :  { %v1199_v56 = vpop.eup %1198 }
 0x673   :  { %392 = vrot.lane.b32.xlu0 %v1199_v56, %s1339_s0 }
 0x674   :  { %v1201_v58 = vpop.eup %1200 }
 0x675   :  { %v382_v59 = vadd.f32 1.0, %v1201_v58 }
 0x677   :  { %1202 = vrcp.f32 %v382_v59  ;;  %v658_v59 = vld [vmem:[#allocation4 + $0x28] sm:$0xff] }
 0x684   :  { %v1203_v60 = vpop.eup %1202 }
 0x685   :  { %v390_v3 = vmul.f32 %v1203_v60, %v388_v63 }
 0x6e5   :  { %v393_v61 = vpop.permute.xlu0 %392 }
 0x6e6   :  { %v395_v62 = vmul.f32 %v1203_v60, %v393_v61 }
 0x6e8   :  { %397 = vrot.lane.b32.xlu0 %v395_v62, %s1339_s0 }
 0x75a   :  { %v398_v6 = vpop.permute.xlu0 %397 }
 0x75b   :  { %v400_v7 = vadd.f32 %v398_v6, %v390_v3 }
 0x75d   :  { %1204 = vtanh.f32 %v400_v7 }
 0x76a   :  { %v1205_v8 = vpop.eup %1204 }
 0x76b   :  { %403 = vrot.lane.b32.xlu1 %v1205_v8, %s1339_s0 }
 0x76f   :  { %408 = vrot.lane.b32.xlu1 %v400_v7, %s1340_s2 }
 0x7dd   :  { %v404_v9 = vpop.permute.xlu1 %403 }
 0x7de   :  { %v406_v10 = vmul.f32 %v1203_v60, %v404_v9 }
 0x7e0   :  { %413 = vrot.lane.b32.xlu0 %v406_v10, %s1341_s28 }
 0x7e1   :  { %v409_v11 = vpop.permute.xlu1 %408 }
 0x7e2   :  { %411 = vst.msk [vmem:[#allocation3] sm:$0xff] %vm59_vm0, %v409_v11 }
 0x7e9   :  { %v420_v12 = vld [vmem:[#allocation3] sm:$0xff] }
 0x7ea   :  { %505 = vrot.lane.b32.xlu1 %v420_v12, %s1339_s0 }
 0x852   :  { %v414_v13 = vpop.permute.xlu0 %413 }
 0x853   :  { %416 = vst.msk [vmem:[#allocation2] sm:$0xff] %vm59_vm0, %v414_v13  ;;  %418 = vst.msk [vmem:[#allocation10 + $0x10] sm:$0xff] %vm59_vm0, %v414_v13 }
 0x85a   :  { %v419_v14 = vld [vmem:[#allocation2] sm:$0xff] }
 0x85b   :  { %1125 = vmatmul.mubr.msk.f32.vlgmr.msra.gmra.mxu1 %vm59_vm0, %v419_v14 }
 0x85c   :  { %1139 = vmatpush3.msra.mxu1 %v1386_v1  ;;  %1146 = vmatprep.mubr.msk.f32.mxu1 %vm1338_vm1, %v1337_v0  ;;  %v506_v26 = vpop.permute.xlu1 %505 }
 0x85d   :  { %1140 = vmatprep.subr.mxu1 %v1337_v0 }
 0x85e   :  { %1141 = vmatpush3.msra.mxu1 %v1388_v2 }
 0x85f   :  { %1142 = vmatprep.subr.mxu1 %v1337_v0 }
 0x860   :  { %1143 = vmatpush3.msra.mxu1 %v1393_v4 }
 0x861   :  { %1144 = vmatprep.subr.mxu1 %v1337_v0 }
 0x862   :  { %1145 = vmatpush3.msra.mxu1 %v1400_v5 }
 0x863   :  { %1160 = vmatprep.subr.mxu1 %v1337_v0 }
 0x91b   :  { %v492_v16 = vpop.f32.mrf.mxu1 }
 0x91c   :  { %v496_v17 = vadd.f32 %v492_v16, %v422_v15 }
 0x91d   :  { %v1126_v18 = vpop.f32.mrf.mxu1 }
 0x91e   :  { %1206 = vtanh.f32 %v496_v17  ;;  %v1034_v20 = vmul.f32 -1.442695, %v496_v17  ;;  %v776_v17 = vld [vmem:[#allocation4 + $0x30] sm:$0xff] }
 0x920   :  { %1208 = vpow2.f32 %v1034_v20 }
 0x92b   :  { %v1207_v19 = vpop.eup %1206 }
 0x92c   :  { %510 = vrot.lane.b32.xlu0 %v1207_v19, %s1339_s0 }
 0x92d   :  { %v1209_v21 = vpop.eup %1208 }
 0x92e   :  { %v500_v22 = vadd.f32 1.0, %v1209_v21 }
 0x930   :  { %1210 = vrcp.f32 %v500_v22 }
 0x93d   :  { %v1211_v23 = vpop.eup %1210 }
 0x93e   :  { %v508_v27 = vmul.f32 %v1211_v23, %v506_v26 }
 0x99e   :  { %v511_v24 = vpop.permute.xlu0 %510 }
 0x99f   :  { %v513_v25 = vmul.f32 %v1211_v23, %v511_v24 }
 0x9a1   :  { %515 = vrot.lane.b32.xlu0 %v513_v25, %s1339_s0 }
 0xa13   :  { %v516_v28 = vpop.permute.xlu0 %515 }
 0xa14   :  { %v518_v29 = vadd.f32 %v516_v28, %v508_v27 }
 0xa16   :  { %1212 = vtanh.f32 %v518_v29 }
 0xa23   :  { %v1213_v30 = vpop.eup %1212 }
 0xa24   :  { %521 = vrot.lane.b32.xlu1 %v1213_v30, %s1339_s0 }
 0xa28   :  { %526 = vrot.lane.b32.xlu1 %v518_v29, %s1340_s2 }
 0xa96   :  { %v522_v31 = vpop.permute.xlu1 %521 }
 0xa97   :  { %v524_v32 = vmul.f32 %v1211_v23, %v522_v31 }
 0xa99   :  { %531 = vrot.lane.b32.xlu0 %v524_v32, %s1341_s28 }
 0xa9a   :  { %v527_v33 = vpop.permute.xlu1 %526 }
 0xa9b   :  { %529 = vst.msk [vmem:[#allocation3] sm:$0xff] %vm59_vm0, %v527_v33 }
 0xaa2   :  { %v538_v34 = vld [vmem:[#allocation3] sm:$0xff] }
 0xaa3   :  { %623 = vrot.lane.b32.xlu1 %v538_v34, %s1339_s0 }
 0xb0b   :  { %v532_v35 = vpop.permute.xlu0 %531 }
 0xb0c   :  { %534 = vst.msk [vmem:[#allocation2] sm:$0xff] %vm59_vm0, %v532_v35  ;;  %536 = vst.msk [vmem:[#allocation10 + $0x18] sm:$0xff] %vm59_vm0, %v532_v35 }
 0xb13   :  { %v537_v36 = vld [vmem:[#allocation2] sm:$0xff] }
 0xb14   :  { %1136 = vmatmul.mubr.msk.f32.vlgmr.msra.gmra.mxu0 %vm59_vm0, %v537_v36 }
 0xb15   :  { %1150 = vmatpush3.msra.mxu0 %v1386_v1  ;;  %1157 = vmatprep.mubr.msk.f32.mxu0 %vm1338_vm1, %v1337_v0  ;;  %v624_v48 = vpop.permute.xlu1 %623 }
 0xb16   :  { %1151 = vmatprep.subr.mxu0 %v1337_v0 }
 0xb17   :  { %1152 = vmatpush3.msra.mxu0 %v1388_v2 }
 0xb18   :  { %1153 = vmatprep.subr.mxu0 %v1337_v0 }
 0xb19   :  { %1154 = vmatpush3.msra.mxu0 %v1393_v4 }
 0xb1a   :  { %1155 = vmatprep.subr.mxu0 %v1337_v0 }
 0xb1b   :  { %1156 = vmatpush3.msra.mxu0 %v1400_v5 }
 0xbd4   :  { %v610_v38 = vpop.f32.mrf.mxu0 }
 0xbd5   :  { %v614_v39 = vadd.f32 %v610_v38, %v540_v37 }
 0xbd6   :  { %v1137_v40 = vpop.f32.mrf.mxu0 }
 0xbd7   :  { %1214 = vtanh.f32 %v614_v39  ;;  %v1036_v42 = vmul.f32 -1.442695, %v614_v39  ;;  %v894_v39 = vld [vmem:[#allocation4 + $0x38] sm:$0xff] }
 0xbd9   :  { %1216 = vpow2.f32 %v1036_v42 }
 0xbe4   :  { %v1215_v41 = vpop.eup %1214 }
 0xbe5   :  { %628 = vrot.lane.b32.xlu0 %v1215_v41, %s1339_s0 }
 0xbe6   :  { %v1217_v43 = vpop.eup %1216 }
 0xbe7   :  { %v618_v44 = vadd.f32 1.0, %v1217_v43 }
 0xbe9   :  { %1218 = vrcp.f32 %v618_v44 }
 0xbf6   :  { %v1219_v45 = vpop.eup %1218 }
 0xbf7   :  { %v626_v49 = vmul.f32 %v1219_v45, %v624_v48 }
 0xc57   :  { %v629_v46 = vpop.permute.xlu0 %628 }
 0xc58   :  { %v631_v47 = vmul.f32 %v1219_v45, %v629_v46 }
 0xc5a   :  { %633 = vrot.lane.b32.xlu0 %v631_v47, %s1339_s0 }
 0xccc   :  { %v634_v50 = vpop.permute.xlu0 %633 }
 0xccd   :  { %v636_v51 = vadd.f32 %v634_v50, %v626_v49 }
 0xccf   :  { %1220 = vtanh.f32 %v636_v51 }
 0xcdc   :  { %v1221_v52 = vpop.eup %1220 }
 0xcdd   :  { %639 = vrot.lane.b32.xlu1 %v1221_v52, %s1339_s0 }
 0xce1   :  { %644 = vrot.lane.b32.xlu1 %v636_v51, %s1340_s2 }
 0xd4f   :  { %v640_v53 = vpop.permute.xlu1 %639 }
 0xd50   :  { %v642_v54 = vmul.f32 %v1219_v45, %v640_v53 }
 0xd52   :  { %649 = vrot.lane.b32.xlu0 %v642_v54, %s1341_s28 }
 0xd53   :  { %v645_v55 = vpop.permute.xlu1 %644 }
 0xd54   :  { %647 = vst.msk [vmem:[#allocation3] sm:$0xff] %vm59_vm0, %v645_v55 }
 0xd5b   :  { %v656_v56 = vld [vmem:[#allocation3] sm:$0xff] }
 0xd5c   :  { %741 = vrot.lane.b32.xlu1 %v656_v56, %s1339_s0 }
 0xdc4   :  { %v650_v57 = vpop.permute.xlu0 %649 }
 0xdc5   :  { %652 = vst.msk [vmem:[#allocation2] sm:$0xff] %vm59_vm0, %v650_v57  ;;  %654 = vst.msk [vmem:[#allocation10 + $0x20] sm:$0xff] %vm59_vm0, %v650_v57 }
 0xdcc   :  { %v655_v58 = vld [vmem:[#allocation2] sm:$0xff] }
 0xdcd   :  { %1147 = vmatmul.mubr.msk.f32.vlgmr.msra.gmra.mxu1 %vm59_vm0, %v655_v58 }
 0xdce   :  { %1161 = vmatpush3.msra.mxu1 %v1386_v1  ;;  %1168 = vmatprep.mubr.msk.f32.mxu1 %vm1338_vm1, %v1337_v0 }
 0xdcf   :  { %1162 = vmatprep.subr.mxu1 %v1337_v0 }
 0xdd0   :  { %1163 = vmatpush3.msra.mxu1 %v1388_v2 }
 0xdd1   :  { %1164 = vmatprep.subr.mxu1 %v1337_v0 }
 0xdd2   :  { %1165 = vmatpush3.msra.mxu1 %v1393_v4 }
 0xdd3   :  { %1166 = vmatprep.subr.mxu1 %v1337_v0  ;;  %v742_v0 = vpop.permute.xlu1 %741 }
 0xdd4   :  { %1167 = vmatpush3.msra.mxu1 %v1400_v5 }
 0xe8d   :  { %v728_v60 = vpop.f32.mrf.mxu1 }
 0xe8e   :  { %v732_v61 = vadd.f32 %v728_v60, %v658_v59 }
 0xe8f   :  { %v1148_v62 = vpop.f32.mrf.mxu1 }
 0xe90   :  { %1222 = vtanh.f32 %v732_v61  ;;  %v1038_v63 = vmul.f32 -1.442695, %v732_v61 }
 0xe92   :  { %1224 = vpow2.f32 %v1038_v63 }
 0xe9d   :  { %v1223_v1 = vpop.eup %1222 }
 0xe9e   :  { %746 = vrot.lane.b32.xlu0 %v1223_v1, %s1339_s0 }
 0xe9f   :  { %v1225_v3 = vpop.eup %1224 }
 0xea0   :  { %v736_v2 = vadd.f32 1.0, %v1225_v3 }
 0xea2   :  { %1226 = vrcp.f32 %v736_v2 }
 0xeaf   :  { %v1227_v6 = vpop.eup %1226 }
 0xeb0   :  { %v744_v5 = vmul.f32 %v1227_v6, %v742_v0 }
 0xf10   :  { %v747_v7 = vpop.permute.xlu0 %746 }
 0xf11   :  { %v749_v4 = vmul.f32 %v1227_v6, %v747_v7 }
 0xf13   :  { %751 = vrot.lane.b32.xlu0 %v749_v4, %s1339_s0 }
 0xf85   :  { %v752_v8 = vpop.permute.xlu0 %751 }
 0xf86   :  { %v754_v9 = vadd.f32 %v752_v8, %v744_v5 }
 0xf88   :  { %1228 = vtanh.f32 %v754_v9 }
 0xf95   :  { %v1229_v10 = vpop.eup %1228 }
 0xf96   :  { %757 = vrot.lane.b32.xlu1 %v1229_v10, %s1339_s0 }
 0xf9a   :  { %762 = vrot.lane.b32.xlu1 %v754_v9, %s1340_s2 }
0x1008   :  { %v758_v11 = vpop.permute.xlu1 %757 }
0x1009   :  { %v760_v12 = vmul.f32 %v1227_v6, %v758_v11 }
0x100b   :  { %767 = vrot.lane.b32.xlu0 %v760_v12, %s1341_s28 }
0x100c   :  { %v763_v13 = vpop.permute.xlu1 %762 }
0x100d   :  { %765 = vst.msk [vmem:[#allocation3] sm:$0xff] %vm59_vm0, %v763_v13 }
0x1014   :  { %v774_v14 = vld [vmem:[#allocation3] sm:$0xff] }
0x1015   :  { %859 = vrot.lane.b32.xlu1 %v774_v14, %s1339_s0 }
0x107d   :  { %v768_v15 = vpop.permute.xlu0 %767 }
0x107e   :  { %770 = vst.msk [vmem:[#allocation2] sm:$0xff] %vm59_vm0, %v768_v15  ;;  %772 = vst.msk [vmem:[#allocation10 + $0x28] sm:$0xff] %vm59_vm0, %v768_v15 }
0x1085   :  { %v773_v16 = vld [vmem:[#allocation2] sm:$0xff] }
0x1086   :  { %1158 = vmatmul.mubr.msk.f32.vlgmr.msra.gmra.mxu0 %vm59_vm0, %v773_v16 }
0x1087   :  { %v860_v28 = vpop.permute.xlu1 %859 }
0x1146   :  { %v846_v18 = vpop.f32.mrf.mxu0 }
0x1147   :  { %v850_v19 = vadd.f32 %v846_v18, %v776_v17 }
0x1148   :  { %v1159_v20 = vpop.f32.mrf.mxu0 }
0x1149   :  { %1230 = vtanh.f32 %v850_v19  ;;  %v1040_v22 = vmul.f32 -1.442695, %v850_v19 }
0x114b   :  { %1232 = vpow2.f32 %v1040_v22 }
0x1156   :  { %v1231_v21 = vpop.eup %1230 }
0x1157   :  { %864 = vrot.lane.b32.xlu0 %v1231_v21, %s1339_s0 }
0x1158   :  { %v1233_v23 = vpop.eup %1232 }
0x1159   :  { %v854_v24 = vadd.f32 1.0, %v1233_v23 }
0x115b   :  { %1234 = vrcp.f32 %v854_v24 }
0x1168   :  { %v1235_v25 = vpop.eup %1234 }
0x1169   :  { %v862_v29 = vmul.f32 %v1235_v25, %v860_v28 }
0x11c9   :  { %v865_v26 = vpop.permute.xlu0 %864 }
0x11ca   :  { %v867_v27 = vmul.f32 %v1235_v25, %v865_v26 }
0x11cc   :  { %869 = vrot.lane.b32.xlu0 %v867_v27, %s1339_s0 }
0x123e   :  { %v870_v30 = vpop.permute.xlu0 %869 }
0x123f   :  { %v872_v31 = vadd.f32 %v870_v30, %v862_v29 }
0x1241   :  { %1236 = vtanh.f32 %v872_v31 }
0x124e   :  { %v1237_v32 = vpop.eup %1236 }
0x124f   :  { %875 = vrot.lane.b32.xlu1 %v1237_v32, %s1339_s0 }
0x1253   :  { %880 = vrot.lane.b32.xlu1 %v872_v31, %s1340_s2 }
0x12c1   :  { %v876_v33 = vpop.permute.xlu1 %875 }
0x12c2   :  { %v878_v34 = vmul.f32 %v1235_v25, %v876_v33 }
0x12c4   :  { %885 = vrot.lane.b32.xlu0 %v878_v34, %s1341_s28 }
0x12c5   :  { %v881_v35 = vpop.permute.xlu1 %880 }
0x12c6   :  { %883 = vst.msk [vmem:[#allocation3] sm:$0xff] %vm59_vm0, %v881_v35 }
0x12cd   :  { %v892_v36 = vld [vmem:[#allocation3] sm:$0xff] }
0x12ce   :  { %977 = vrot.lane.b32.xlu1 %v892_v36, %s1339_s0 }
0x1336   :  { %v886_v37 = vpop.permute.xlu0 %885 }
0x1337   :  { %888 = vst.msk [vmem:[#allocation2] sm:$0xff] %vm59_vm0, %v886_v37  ;;  %890 = vst.msk [vmem:[#allocation10 + $0x30] sm:$0xff] %vm59_vm0, %v886_v37 }
0x133e   :  { %v891_v38 = vld [vmem:[#allocation2] sm:$0xff] }
0x133f   :  { %1169 = vmatmul.mubr.msk.f32.vlgmr.msra.gmra.mxu1 %vm59_vm0, %v891_v38 }
0x1340   :  { %v978_v50 = vpop.permute.xlu1 %977 }
0x13ff   :  { %v964_v40 = vpop.f32.mrf.mxu1 }
0x1400   :  { %v968_v41 = vadd.f32 %v964_v40, %v894_v39 }
0x1401   :  { %v1170_v42 = vpop.f32.mrf.mxu1 }
0x1402   :  { %1238 = vtanh.f32 %v968_v41  ;;  %v1042_v44 = vmul.f32 -1.442695, %v968_v41 }
0x1404   :  { %1240 = vpow2.f32 %v1042_v44 }
0x140f   :  { %v1239_v43 = vpop.eup %1238 }
0x1410   :  { %982 = vrot.lane.b32.xlu0 %v1239_v43, %s1339_s0 }
0x1411   :  { %v1241_v45 = vpop.eup %1240 }
0x1412   :  { %v972_v46 = vadd.f32 1.0, %v1241_v45 }
0x1414   :  { %1242 = vrcp.f32 %v972_v46 }
0x1421   :  { %v1243_v47 = vpop.eup %1242 }
0x1422   :  { %v980_v51 = vmul.f32 %v1243_v47, %v978_v50 }
0x1482   :  { %v983_v48 = vpop.permute.xlu0 %982 }
0x1483   :  { %v985_v49 = vmul.f32 %v1243_v47, %v983_v48 }
0x1485   :  { %987 = vrot.lane.b32.xlu0 %v985_v49, %s1339_s0 }
0x14f7   :  { %v988_v52 = vpop.permute.xlu0 %987 }
0x14f8   :  { %v990_v53 = vadd.f32 %v988_v52, %v980_v51 }
0x14fa   :  { %1244 = vtanh.f32 %v990_v53 }
0x1507   :  { %v1245_v54 = vpop.eup %1244 }
0x1508   :  { %993 = vrot.lane.b32.xlu1 %v1245_v54, %s1339_s0 }
0x150c   :  { %998 = vrot.lane.b32.xlu1 %v990_v53, %s1340_s2 }
0x157a   :  { %v994_v55 = vpop.permute.xlu1 %993 }
0x157b   :  { %v996_v56 = vmul.f32 %v1243_v47, %v994_v55 }
0x157d   :  { %1003 = vrot.lane.b32.xlu0 %v996_v56, %s1341_s28 }
0x157e   :  { %v999_v57 = vpop.permute.xlu1 %998 }
0x157f   :  { %1001 = vst.msk [vmem:[#allocation3] sm:$0xff] %vm59_vm0, %v999_v57 }
0x15ef   :  { %v1004_v58 = vpop.permute.xlu0 %1003 }
0x15f0   :  { %1006 = vst.msk [vmem:[#allocation2] sm:$0xff] %vm59_vm0, %v1004_v58  ;;  %1008 = vst.msk [vmem:[#allocation10 + $0x38] sm:$0xff] %vm59_vm0, %v1004_v58 }
0x15f1   :  { %1317 = shalt.err (!%p1314_p5)
}
0x15f2   :  { %1020 = dma.vmem_to_hbm [thread:$0]  %s1015_s30, 1024, %s1558_s3, [#allocation6], %s1334_s20, %s1334_s20, %s1335_s21  }
0x15f3   :  { %1330 = dma.done.wait [#allocation6], 1024  }
0x15f4   :  { %1331 = vsyncadd [#allocation6], 4294966272 }
0x15f5   :  { %1024 = vsyncpa [#allocation5], 1 }
0x15f6   :  { %1025 = vsyncpa [#allocation8], 1 }
0x15f7   :  { %1026 = vsyncpa [#allocation6], 1 }

</bundles_post_ra>
